<compile_context>
chip_gen: v5e
topology: v5e:2x2
jax: 0.10.0
libtpu: 0.0.40
codegen_flags: <defaults>
</compile_context>

<pallas_src>
import functools

import jax
import jax.numpy as jnp
from jax.experimental import pallas as pl
from jax.experimental.pallas import tpu as pltpu

_LANE = 128
_TILE_BYTES_BUDGET = 8 * 1024 * 1024   # per input, per pipeline buffer
_VMEM_LIMIT_BYTES = 48 * 1024 * 1024   # 2 inputs x 2 buffers x 8 MiB + partials


def _round_up(a: int, b: int) -> int:
    return (a + b - 1) // b * b


def _choose_geometry(rows: int, sub_q: int, r_cap: int):
    """Return (p_axis, k_axis, rows_per_block).

    p_axis * k_axis blocks of rows_per_block rows cover `rows`, every block
    starts in-bounds (the last block is at most partially out-of-bounds), and
    rows_per_block is a multiple of sub_q and <= r_cap.
    """
    if rows >= 2 * sub_q:
        # Two parallel slices (feeds both TensorCores on v7x; free elsewhere).
        half = _round_up(pl.cdiv(rows, 2), sub_q)
        r = min(r_cap, half)
        nb = pl.cdiv(rows, r)
        if nb % 2 == 0:
            return 2, nb // 2, r
        # Odd block count: nudge R down so the block count becomes even.
        r2 = _round_up(pl.cdiv(rows, nb + 1), sub_q)
        if sub_q <= r2 <= r_cap:
            nb2 = pl.cdiv(rows, r2)
            if nb2 % 2 == 0:
                return 2, nb2 // 2, r2
    # Single parallel slice.
    r = min(r_cap, rows)
    return 1, pl.cdiv(rows, r), r


def _dice_partial_kernel(x_ref, t_ref, inter_ref, xsum_ref, tsum_ref,
                         inter_acc, xsum_acc, tsum_acc, *,
                         k_axis: int, rows_per_block: int, group_rows: int,
                         total_elems: int, use_sigmoid: bool, needs_mask: bool):
    """One (N, R, 128) streamed tile of the reduction.

    Folds the tile into (N, group_rows, 128) f32 partial sums carried in
    vregs, accumulates them into VMEM scratch across the 'arbitrary' k axis,
    and stores the per-parallel-slice partials once at the last k.
    """
    k = pl.program_id(1)
    n = x_ref.shape[0]
    n_groups = rows_per_block // group_rows

    if needs_mask:
        # Flat element index of the first element of this block.
        block_elem0 = (pl.program_id(0) * k_axis + k) * rows_per_block * _LANE
        row_iota = jax.lax.broadcasted_iota(jnp.int32, (group_rows, _LANE), 0)
        lane_iota = jax.lax.broadcasted_iota(jnp.int32, (group_rows, _LANE), 1)
        group_iota = row_iota * _LANE + lane_iota

    def accum(start, carry):
        inter_p, x_p, t_p = carry
        xg = x_ref[:, pl.ds(start, group_rows), :].astype(jnp.float32)
        tg = t_ref[:, pl.ds(start, group_rows), :].astype(jnp.float32)
        if use_sigmoid:
            # sigmoid via tanh keeps the transcendental on the EUP slot.
            xg = 0.5 * (jnp.tanh(0.5 * xg) + 1.0)
        if needs_mask:
            idx = block_elem0 + start * _LANE + group_iota
            valid = (idx < total_elems)[None]          # (1, group_rows, 128)
            xg = jnp.where(valid, xg, 0.0)
            tg = jnp.where(valid, tg, 0.0)
        return (inter_p + xg * tg, x_p + xg, t_p + tg)

    zeros = jnp.zeros((n, group_rows, _LANE), jnp.float32)
    carry = (zeros, zeros, zeros)
    if n_groups <= 8:
        # Short fixed trip count: fully static for LLO visibility.
        for g in range(n_groups):
            carry = accum(g * group_rows, carry)
    else:
        carry = jax.lax.fori_loop(
            0, n_groups,
            lambda g, c: accum(pl.multiple_of(g * group_rows, group_rows), c),
            carry, unroll=8)
    inter_p, x_p, t_p = carry

    @pl.when(k == 0)
    def _init():
        inter_acc[...] = jnp.zeros_like(inter_acc)
        xsum_acc[...] = jnp.zeros_like(xsum_acc)
        tsum_acc[...] = jnp.zeros_like(tsum_acc)

    inter_acc[...] += inter_p
    xsum_acc[...] += x_p
    tsum_acc[...] += t_p

    @pl.when(k == k_axis - 1)
    def _finalize():
        inter_ref[...] = inter_acc[...]
        xsum_ref[...] = xsum_acc[...]
        tsum_ref[...] = tsum_acc[...]


def dice_loss(inp, target, activation: str = "none",
              tile_budget_bytes: int = _TILE_BYTES_BUDGET):
    """Matches DiceLoss.forward: inp/target are (N, ...) e.g. NCHW."""
    if inp.shape[0] != target.shape[0]:
        raise ValueError("batch dims must match")
    n = inp.shape[0]
    use_sigmoid = activation == "sigmoid"
    # TODO(synk): only 'none' and 'sigmoid' activations exist in the PyTorch module.

    x2d = jnp.reshape(inp, (n, -1))
    t2d = jnp.reshape(target, (n, -1))
    d = x2d.shape[1]

    itemsize = max(x2d.dtype.itemsize, t2d.dtype.itemsize)
    min_item = min(x2d.dtype.itemsize, t2d.dtype.itemsize)
    sub_q = 8 if min_item >= 4 else (16 if min_item == 2 else 32)

    # ---- lane/sublane-dense layout --------------------------------------
    d_rows = pl.cdiv(d, _LANE)
    rows = _round_up(d_rows, sub_q)
    d_padded = rows * _LANE
    if d_padded != d:
        # <= sub_q*128-1 padded elements per row (often zero).  Pad values
        # never contribute: zeros, and the kernel masks flat index >= d.
        x2d = jnp.pad(x2d, ((0, 0), (0, d_padded - d)))
        t2d = jnp.pad(t2d, ((0, 0), (0, d_padded - d)))
    x3 = x2d.reshape(n, rows, _LANE)
    t3 = t2d.reshape(n, rows, _LANE)

    # ---- tile geometry ----------------------------------------------------
    row_bytes = n * _LANE * itemsize
    r_cap = max(sub_q, tile_budget_bytes // row_bytes // sub_q * sub_q)
    p_axis, k_axis, rpb = _choose_geometry(rows, sub_q, r_cap)

    covered_rows = p_axis * k_axis * rpb
    needs_mask = (covered_rows > rows) or (d_padded != d and use_sigmoid)

    kernel = functools.partial(
        _dice_partial_kernel, k_axis=k_axis, rows_per_block=rpb,
        group_rows=sub_q, total_elems=d, use_sigmoid=use_sigmoid,
        needs_mask=needs_mask)

    in_spec = pl.BlockSpec((n, rpb, _LANE), lambda p, k: (0, p * k_axis + k, 0))
    out_spec = pl.BlockSpec((None, n, sub_q, _LANE), lambda p, k: (p, 0, 0, 0))
    part_shape = jax.ShapeDtypeStruct((p_axis, n, sub_q, _LANE), jnp.float32)

    cost = pl.CostEstimate(
        flops=int(4 * n * d),
        transcendentals=int(n * d) if use_sigmoid else 0,
        bytes_accessed=int(x3.size * x3.dtype.itemsize
                           + t3.size * t3.dtype.itemsize
                           + 3 * p_axis * n * sub_q * _LANE * 4))

    inter_p, xsum_p, tsum_p = pl.pallas_call(
        kernel,
        grid=(p_axis, k_axis),
        in_specs=[in_spec, in_spec],
        out_specs=(out_spec, out_spec, out_spec),
        out_shape=(part_shape, part_shape, part_shape),
        scratch_shapes=[pltpu.VMEM((n, sub_q, _LANE), jnp.float32)] * 3,
        compiler_params=pltpu.CompilerParams(
            dimension_semantics=("parallel", "arbitrary"),
            vmem_limit_bytes=_VMEM_LIMIT_BYTES),
        cost_estimate=cost,
    )(x3, t3)

    # Tiny epilogue: single cross-lane reduce of the (P, N, sub_q, 128)
    # partials, then the dice combine / mean (matches PyTorch exactly).
    smooth = jnp.float32(1.0)
    intersection = jnp.sum(inter_p, axis=(0, 2, 3))     # (N,)
    x_sum = jnp.sum(xsum_p, axis=(0, 2, 3))
    t_sum = jnp.sum(tsum_p, axis=(0, 2, 3))
    dice = 2.0 * (intersection + smooth) / (x_sum + t_sum + smooth)
    return (1.0 - jnp.sum(dice) / n).astype(jnp.float32)


def _reference_dice_loss(inp, target, activation="none"):
    x = inp.astype(jnp.float32)
    if activation == "sigmoid":
        x = jax.nn.sigmoid(x)
    n = x.shape[0]
    x = x.reshape(n, -1)
    t = target.reshape(n, -1).astype(jnp.float32)
    smooth = 1.0
    inter = jnp.sum(x * t, axis=1)
    dice = 2.0 * (inter + smooth) / (jnp.sum(x, axis=1) + jnp.sum(t, axis=1) + smooth)
    return 1.0 - jnp.sum(dice) / n


if __name__ == "__main__":
    key = jax.random.PRNGKey(0)
    loss_fn = jax.jit(dice_loss,
                      static_argnames=("activation", "tile_budget_bytes"))

    # (shape, dtype, activation, tile_budget)
    cases = [
        ((2, 4, 16, 16), jnp.float32, "none", None),      # single tiny block
        ((2, 4, 16, 16), jnp.bfloat16, "sigmoid", None),   # bf16, sub_q=16, masked pad
        ((2, 3, 10, 10), jnp.float32, "sigmoid", None),    # ragged tail, p=1, mask
        ((2, 3, 33, 33), jnp.float32, "sigmoid", None),    # ragged tail, p=2, mask
        ((2, 4, 128, 128), jnp.float32, "none", None),     # p=2, fori_loop(unroll=8)
        ((2, 4, 128, 64), jnp.float32, "none", 32 * 1024), # forced multi-k streaming
    ]

    for shape, dtype, activation, budget in cases:
        key, k1, k2 = jax.random.split(key, 3)
        x = jax.random.uniform(k1, shape, dtype=jnp.float32).astype(dtype)
        tgt = (jax.random.uniform(k2, shape) > 0.5).astype(jnp.float32)

        kwargs = {"activation": activation}
        if budget is not None:
            kwargs["tile_budget_bytes"] = budget
        loss = loss_fn(x, tgt, **kwargs)
        jax.block_until_ready(loss)

        ref = _reference_dice_loss(x, tgt, activation=activation)
        assert jnp.allclose(loss, ref, atol=2e-5, rtol=1e-4), (
            shape, dtype, activation, loss, ref)

    print("KERNEL_OK")
</pallas_src>

<mosaic_0001>
module attributes {stable_mosaic.version = 11 : i64} {
  func.func @_dice_partial_kernel(%arg0: i32, %arg1: i32, %arg2: memref<2x8x128xf32, #tpu.memory_space<vmem>>, %arg3: memref<2x8x128xf32, #tpu.memory_space<vmem>>, %arg4: memref<1x2x8x128xf32, #tpu.memory_space<vmem>>, %arg5: memref<1x2x8x128xf32, #tpu.memory_space<vmem>>, %arg6: memref<1x2x8x128xf32, #tpu.memory_space<vmem>>, %arg7: memref<2x8x128xf32, #tpu.memory_space<vmem>>, %arg8: memref<2x8x128xf32, #tpu.memory_space<vmem>>, %arg9: memref<2x8x128xf32, #tpu.memory_space<vmem>>) attributes {dimension_semantics = [#tpu.dimension_semantics<parallel>, #tpu.dimension_semantics<arbitrary>], iteration_bounds = array<i64: 1, 1>, scalar_prefetch = 0 : i64, scratch_operands = 3 : i64, tpu.core_type = #tpu.core_type<tc>, window_params = [{transform_indices = @transform_0, window_bounds = array<i64: 2, 8, 128>}, {transform_indices = @transform_1, window_bounds = array<i64: 2, 8, 128>}, {transform_indices = @transform_2, window_bounds = array<i64: 1, 2, 8, 128>}, {transform_indices = @transform_3, window_bounds = array<i64: 1, 2, 8, 128>}, {transform_indices = @transform_4, window_bounds = array<i64: 1, 2, 8, 128>}]} {
    %cst = arith.constant 0.000000e+00 : f32
    %0 = vector.broadcast %cst : f32 to vector<2x8x128xf32>
    %c0 = arith.constant 0 : index
    %c0_0 = arith.constant 0 : index
    %c0_1 = arith.constant 0 : index
    %1 = vector.load %arg2[%c0, %c0_0, %c0_1] : memref<2x8x128xf32, #tpu.memory_space<vmem>>, vector<2x8x128xf32>
    %c0_2 = arith.constant 0 : index
    %c0_3 = arith.constant 0 : index
    %c0_4 = arith.constant 0 : index
    %2 = vector.load %arg3[%c0_2, %c0_3, %c0_4] : memref<2x8x128xf32, #tpu.memory_space<vmem>>, vector<2x8x128xf32>
    %3 = arith.mulf %1, %2 : vector<2x8x128xf32>
    %4 = arith.addf %0, %3 : vector<2x8x128xf32>
    %5 = arith.addf %0, %1 : vector<2x8x128xf32>
    %6 = arith.addf %0, %2 : vector<2x8x128xf32>
    %c0_i32 = arith.constant 0 : i32
    %7 = arith.cmpi eq, %arg1, %c0_i32 : i32
    %8 = arith.extui %7 : i1 to i32
    %c0_i32_5 = arith.constant 0 : i32
    %9 = arith.cmpi ne, %8, %c0_i32_5 : i32
    scf.if %9 {
      %cst_26 = arith.constant 0.000000e+00 : f32
      %22 = vector.broadcast %cst_26 : f32 to vector<2x8x128xf32>
      %c0_27 = arith.constant 0 : index
      %c0_28 = arith.constant 0 : index
      %c0_29 = arith.constant 0 : index
      %23 = vector.load %arg7[%c0_27, %c0_28, %c0_29] : memref<2x8x128xf32, #tpu.memory_space<vmem>>, vector<2x8x128xf32>
      tpu.vector_store %arg7[%c0_27, %c0_28, %c0_29], %22 {strides = array<i32>} : memref<2x8x128xf32, #tpu.memory_space<vmem>>, vector<2x8x128xf32>,
      %cst_30 = arith.constant 0.000000e+00 : f32
      %24 = vector.broadcast %cst_30 : f32 to vector<2x8x128xf32>
      %c0_31 = arith.constant 0 : index
      %c0_32 = arith.constant 0 : index
      %c0_33 = arith.constant 0 : index
      %25 = vector.load %arg8[%c0_31, %c0_32, %c0_33] : memref<2x8x128xf32, #tpu.memory_space<vmem>>, vector<2x8x128xf32>
      tpu.vector_store %arg8[%c0_31, %c0_32, %c0_33], %24 {strides = array<i32>} : memref<2x8x128xf32, #tpu.memory_space<vmem>>, vector<2x8x128xf32>,
      %cst_34 = arith.constant 0.000000e+00 : f32
      %26 = vector.broadcast %cst_34 : f32 to vector<2x8x128xf32>
      %c0_35 = arith.constant 0 : index
      %c0_36 = arith.constant 0 : index
      %c0_37 = arith.constant 0 : index
      %27 = vector.load %arg9[%c0_35, %c0_36, %c0_37] : memref<2x8x128xf32, #tpu.memory_space<vmem>>, vector<2x8x128xf32>
      tpu.vector_store %arg9[%c0_35, %c0_36, %c0_37], %26 {strides = array<i32>} : memref<2x8x128xf32, #tpu.memory_space<vmem>>, vector<2x8x128xf32>,
    } else {
    }
    %c0_6 = arith.constant 0 : index
    %c0_7 = arith.constant 0 : index
    %c0_8 = arith.constant 0 : index
    %10 = vector.load %arg7[%c0_6, %c0_7, %c0_8] : memref<2x8x128xf32, #tpu.memory_space<vmem>>, vector<2x8x128xf32>
    %11 = arith.addf %10, %4 : vector<2x8x128xf32>
    %c0_9 = arith.constant 0 : index
    %c0_10 = arith.constant 0 : index
    %c0_11 = arith.constant 0 : index
    %12 = vector.load %arg7[%c0_9, %c0_10, %c0_11] : memref<2x8x128xf32, #tpu.memory_space<vmem>>, vector<2x8x128xf32>
    tpu.vector_store %arg7[%c0_9, %c0_10, %c0_11], %11 {strides = array<i32>} : memref<2x8x128xf32, #tpu.memory_space<vmem>>, vector<2x8x128xf32>,
    %c0_12 = arith.constant 0 : index
    %c0_13 = arith.constant 0 : index
    %c0_14 = arith.constant 0 : index
    %13 = vector.load %arg8[%c0_12, %c0_13, %c0_14] : memref<2x8x128xf32, #tpu.memory_space<vmem>>, vector<2x8x128xf32>
    %14 = arith.addf %13, %5 : vector<2x8x128xf32>
    %c0_15 = arith.constant 0 : index
    %c0_16 = arith.constant 0 : index
    %c0_17 = arith.constant 0 : index
    %15 = vector.load %arg8[%c0_15, %c0_16, %c0_17] : memref<2x8x128xf32, #tpu.memory_space<vmem>>, vector<2x8x128xf32>
    tpu.vector_store %arg8[%c0_15, %c0_16, %c0_17], %14 {strides = array<i32>} : memref<2x8x128xf32, #tpu.memory_space<vmem>>, vector<2x8x128xf32>,
    %c0_18 = arith.constant 0 : index
    %c0_19 = arith.constant 0 : index
    %c0_20 = arith.constant 0 : index
    %16 = vector.load %arg9[%c0_18, %c0_19, %c0_20] : memref<2x8x128xf32, #tpu.memory_space<vmem>>, vector<2x8x128xf32>
    %17 = arith.addf %16, %6 : vector<2x8x128xf32>
    %c0_21 = arith.constant 0 : index
    %c0_22 = arith.constant 0 : index
    %c0_23 = arith.constant 0 : index
    %18 = vector.load %arg9[%c0_21, %c0_22, %c0_23] : memref<2x8x128xf32, #tpu.memory_space<vmem>>, vector<2x8x128xf32>
    tpu.vector_store %arg9[%c0_21, %c0_22, %c0_23], %17 {strides = array<i32>} : memref<2x8x128xf32, #tpu.memory_space<vmem>>, vector<2x8x128xf32>,
    %c0_i32_24 = arith.constant 0 : i32
    %19 = arith.cmpi eq, %arg1, %c0_i32_24 : i32
    %20 = arith.extui %19 : i1 to i32
    %c0_i32_25 = arith.constant 0 : i32
    %21 = arith.cmpi ne, %20, %c0_i32_25 : i32
    scf.if %21 {
      %c0_26 = arith.constant 0 : index
      %c0_27 = arith.constant 0 : index
      %c0_28 = arith.constant 0 : index
      %22 = vector.load %arg7[%c0_26, %c0_27, %c0_28] : memref<2x8x128xf32, #tpu.memory_space<vmem>>, vector<2x8x128xf32>
      %c0_29 = arith.constant 0 : index
      %c0_30 = arith.constant 0 : index
      %c0_31 = arith.constant 0 : index
      %c0_32 = arith.constant 0 : index
      %23 = vector.load %arg4[%c0_29, %c0_30, %c0_31, %c0_32] : memref<1x2x8x128xf32, #tpu.memory_space<vmem>>, vector<1x2x8x128xf32>
      %24 = vector.shape_cast %23 : vector<1x2x8x128xf32> to vector<2x8x128xf32>
      %25 = vector.shape_cast %22 : vector<2x8x128xf32> to vector<1x2x8x128xf32>
      tpu.vector_store %arg4[%c0_29, %c0_30, %c0_31, %c0_32], %25 {strides = array<i32>} : memref<1x2x8x128xf32, #tpu.memory_space<vmem>>, vector<1x2x8x128xf32>,
      %c0_33 = arith.constant 0 : index
      %c0_34 = arith.constant 0 : index
      %c0_35 = arith.constant 0 : index
      %26 = vector.load %arg8[%c0_33, %c0_34, %c0_35] : memref<2x8x128xf32, #tpu.memory_space<vmem>>, vector<2x8x128xf32>
      %c0_36 = arith.constant 0 : index
      %c0_37 = arith.constant 0 : index
      %c0_38 = arith.constant 0 : index
      %c0_39 = arith.constant 0 : index
      %27 = vector.load %arg5[%c0_36, %c0_37, %c0_38, %c0_39] : memref<1x2x8x128xf32, #tpu.memory_space<vmem>>, vector<1x2x8x128xf32>
      %28 = vector.shape_cast %27 : vector<1x2x8x128xf32> to vector<2x8x128xf32>
      %29 = vector.shape_cast %26 : vector<2x8x128xf32> to vector<1x2x8x128xf32>
      tpu.vector_store %arg5[%c0_36, %c0_37, %c0_38, %c0_39], %29 {strides = array<i32>} : memref<1x2x8x128xf32, #tpu.memory_space<vmem>>, vector<1x2x8x128xf32>,
      %c0_40 = arith.constant 0 : index
      %c0_41 = arith.constant 0 : index
      %c0_42 = arith.constant 0 : index
      %30 = vector.load %arg9[%c0_40, %c0_41, %c0_42] : memref<2x8x128xf32, #tpu.memory_space<vmem>>, vector<2x8x128xf32>
      %c0_43 = arith.constant 0 : index
      %c0_44 = arith.constant 0 : index
      %c0_45 = arith.constant 0 : index
      %c0_46 = arith.constant 0 : index
      %31 = vector.load %arg6[%c0_43, %c0_44, %c0_45, %c0_46] : memref<1x2x8x128xf32, #tpu.memory_space<vmem>>, vector<1x2x8x128xf32>
      %32 = vector.shape_cast %31 : vector<1x2x8x128xf32> to vector<2x8x128xf32>
      %33 = vector.shape_cast %30 : vector<2x8x128xf32> to vector<1x2x8x128xf32>
      tpu.vector_store %arg6[%c0_43, %c0_44, %c0_45, %c0_46], %33 {strides = array<i32>} : memref<1x2x8x128xf32, #tpu.memory_space<vmem>>, vector<1x2x8x128xf32>,
    } else {
    }
    return
  }
  func.func @transform_0(%arg0: i32, %arg1: i32) -> (i32, i32, i32) {
    %c1_i32 = arith.constant 1 : i32
    %0 = arith.muli %arg0, %c1_i32 : i32
    %1 = arith.addi %0, %arg1 : i32
    %c0_i32 = arith.constant 0 : i32
    %c0_i32_0 = arith.constant 0 : i32
    %c0_i32_1 = arith.constant 0 : i32
    return %c0_i32, %1, %c0_i32_0 : i32, i32, i32
  }
  func.func @transform_1(%arg0: i32, %arg1: i32) -> (i32, i32, i32) {
    %c1_i32 = arith.constant 1 : i32
    %0 = arith.muli %arg0, %c1_i32 : i32
    %1 = arith.addi %0, %arg1 : i32
    %c0_i32 = arith.constant 0 : i32
    %c0_i32_0 = arith.constant 0 : i32
    %c0_i32_1 = arith.constant 0 : i32
    return %c0_i32, %1, %c0_i32_0 : i32, i32, i32
  }
  func.func @transform_2(%arg0: i32, %arg1: i32) -> (i32, i32, i32, i32) {
    %c0_i32 = arith.constant 0 : i32
    %c0_i32_0 = arith.constant 0 : i32
    %c0_i32_1 = arith.constant 0 : i32
    %c0_i32_2 = arith.constant 0 : i32
    return %arg0, %c0_i32, %c0_i32_0, %c0_i32_1 : i32, i32, i32, i32
  }
  func.func @transform_3(%arg0: i32, %arg1: i32) -> (i32, i32, i32, i32) {
    %c0_i32 = arith.constant 0 : i32
    %c0_i32_0 = arith.constant 0 : i32
    %c0_i32_1 = arith.constant 0 : i32
    %c0_i32_2 = arith.constant 0 : i32
    return %arg0, %c0_i32, %c0_i32_0, %c0_i32_1 : i32, i32, i32, i32
  }
  func.func @transform_4(%arg0: i32, %arg1: i32) -> (i32, i32, i32, i32) {
    %c0_i32 = arith.constant 0 : i32
    %c0_i32_0 = arith.constant 0 : i32
    %c0_i32_1 = arith.constant 0 : i32
    %c0_i32_2 = arith.constant 0 : i32
    return %arg0, %c0_i32, %c0_i32_0, %c0_i32_1 : i32, i32, i32, i32
  }
}

</mosaic_0001>

<bundles_post_ra>
// kernel: dice_loss.1
= control target key start
LH: loop header
LB: loop body
LE: loop exit
PB: predicated region body
PF: predicated region fallthrough
CT: control target
= control target key end

     0   :  { %s182_s0 = inlined_call_operand.vmem [shape: f32[2,8,128], index: 0, kind: input, shape index: {}]   ;;  %s183_s1 = inlined_call_operand.vmem [shape: f32[2,8,128], index: 1, kind: input, shape index: {}]   ;;  %s184_s3 = inlined_call_operand.vmem [shape: f32[1,2,8,128], index: 3, kind: output, shape index: {1}]   ;;  %s185_s2 = inlined_call_operand.vmem [shape: f32[1,2,8,128], index: 2, kind: output, shape index: {0}]   ;;  %s186_s4 = inlined_call_operand.vmem [shape: f32[1,2,8,128], index: 4, kind: output, shape index: {2}]  }
   0x1   :  { %v48_v0 = vld [vmem:[%s182_s0] sm:$0xff]  ;;  %v49_v2 = vld [vmem:[%s182_s0 + $0x8] sm:$0xff] }
   0x2   :  { %v50_v1 = vld [vmem:[%s183_s1] sm:$0xff]  ;;  %v51_v4 = vld [vmem:[%s183_s1 + $0x8] sm:$0xff]  ;;  %97 = vst [vmem:[%s184_s3] sm:$0xff] %v48_v0 }
   0x3   :  { %v52_v3 = vmul.f32 %v50_v1, %v48_v0  ;;  %v53_v5 = vmul.f32 %v51_v4, %v49_v2  ;;  %98 = vst [vmem:[%s184_s3 + $0x8] sm:$0xff] %v49_v2 }
   0x4   :  { %101 = vst [vmem:[%s186_s4] sm:$0xff] %v50_v1 }
   0x5   :  { %93 = vst [vmem:[%s185_s2] sm:$0xff] %v52_v3 }
   0x6   :  { %94 = vst [vmem:[%s185_s2 + $0x8] sm:$0xff] %v53_v5 }
   0x7   :  { %102 = vst [vmem:[%s186_s4 + $0x8] sm:$0xff] %v51_v4 }

</bundles_post_ra>
